<compile_context>
chip_gen: v7x
topology: tpu7x:2x2x1
jax: 0.10.0
libtpu: 0.0.40
codegen_flags: <defaults>
</compile_context>

<pallas_src>
import functools

import jax
import jax.numpy as jnp
from jax.experimental import pallas as pl
from jax.experimental.pallas import tpu as pltpu

# ----------------------- small synthetic config ------------------------------
BATCH = 2
SEQ = 8            # num_patches
HIDDEN = 32        # embed_dim
INTER = 64         # intermediate_size
NUM_HEADS = 4
HEAD_DIM = HIDDEN // NUM_HEADS
EPS = 1e-6
SCALE = HEAD_DIM ** -0.5


# ------------------------------- kernel --------------------------------------
def _normalize(v):
    """LayerNorm without the affine (gamma/beta are folded into the next matmul)."""
    mu = jnp.mean(v, axis=-1, keepdims=True)
    var = jnp.mean((v - mu) ** 2, axis=-1, keepdims=True)
    return (v - mu) * jax.lax.rsqrt(var + EPS)


def siglip_encoder_layer_kernel(
    hs_ref,                       # (B*S, E)   whole batch, lane-dense rows
    wqkv_ref, bqkv_ref,           # (E, 3E), (1, 3E)  [ln1 affine + q-scale folded]
    wo_ref, bo_ref,               # (E, E), (1, E)
    w1_ref, b1_ref,               # (E, I), (1, I)    [ln2 affine folded]
    w2_ref, b2_ref,               # (I, E), (1, E)
    out_ref,                      # (B*S, E)
    *, batch, seq, heads, head_dim,
):
    E = heads * head_dim
    x = hs_ref[...]                                           # (B*S, E) residual

    # ----- LayerNorm 1 (affine folded into wqkv/bqkv) -----
    xn = _normalize(x)

    # ----- fused QKV projection (one wide matmul) -----
    qkv = (jnp.dot(xn, wqkv_ref[...], preferred_element_type=jnp.float32)
           + bqkv_ref[...])                                   # (B*S, 3E)
    q = qkv[:, 0 * E:1 * E]
    k = qkv[:, 1 * E:2 * E]
    v = qkv[:, 2 * E:3 * E]

    # ----- gather heads onto a single leading batch axis: n = h*B + b -----
    def to_heads(t):                                          # (B*S, E) -> (H*B, S, D)
        parts = [t[:, h * head_dim:(h + 1) * head_dim].reshape(batch, seq, head_dim)
                 for h in range(heads)]
        return jnp.concatenate(parts, axis=0)

    qb = to_heads(q)
    kb = to_heads(k)
    vb = to_heads(v)

    # ----- batched scores + single softmax over all (head, batch) tiles -----
    s = jnp.einsum("nqd,nkd->nqk", qb, kb,
                   preferred_element_type=jnp.float32)        # (H*B, S, S)
    s_max = jnp.max(s, axis=-1, keepdims=True)
    p = jnp.exp(s - s_max)
    p = p * pl.reciprocal(jnp.sum(p, axis=-1, keepdims=True), approx=True)
    ob = jnp.einsum("nqk,nkd->nqd", p, vb,
                    preferred_element_type=jnp.float32)       # (H*B, S, D)

    # ----- back to (B*S, E) with torch head-major lane order, one out matmul -----
    o2d = jnp.concatenate(
        [ob[h * batch:(h + 1) * batch].reshape(batch * seq, head_dim)
         for h in range(heads)],
        axis=1)                                               # (B*S, E)
    attn = (jnp.dot(o2d, wo_ref[...], preferred_element_type=jnp.float32)
            + bo_ref[...])

    # ----- residual 1 -----
    x1 = x + attn

    # ----- LayerNorm 2 (affine folded into w1/b1) + MLP (gelu tanh) -----
    x2 = _normalize(x1)
    hmid = (jnp.dot(x2, w1_ref[...], preferred_element_type=jnp.float32)
            + b1_ref[...])
    c = jnp.float32(0.7978845608028654)                       # sqrt(2/pi)
    g = 0.5 * hmid * (1.0 + jnp.tanh(c * (hmid + 0.044715 * hmid * hmid * hmid)))
    mlp = (jnp.dot(g, w2_ref[...], preferred_element_type=jnp.float32)
           + b2_ref[...])

    # ----- residual 2 -----
    out_ref[...] = (x1 + mlp).astype(out_ref.dtype)


# ------------------------------ wrapper ---------------------------------------
def siglip_encoder_layer(hidden_states, params):
    B, S, E = hidden_states.shape
    H = NUM_HEADS
    D = E // H

    x2d = hidden_states.reshape(B * S, E)

    args = (
        x2d,
        params["wqkv"], params["bqkv"],
        params["wo"], params["bo"],
        params["w1"], params["b1"],
        params["w2"], params["b2"],
    )

    def full_spec(shape):
        nd = len(shape)
        return pl.BlockSpec(shape, lambda i, _nd=nd: (0,) * _nd)

    kernel = functools.partial(
        siglip_encoder_layer_kernel,
        batch=B, seq=S, heads=H, head_dim=D)

    out2d = pl.pallas_call(
        kernel,
        out_shape=jax.ShapeDtypeStruct((B * S, E), hidden_states.dtype),
        grid=(1,),
        in_specs=[full_spec(a.shape) for a in args],
        out_specs=pl.BlockSpec((B * S, E), lambda i: (0, 0)),
        compiler_params=pltpu.CompilerParams(
            dimension_semantics=("arbitrary",)),
    )(*args)

    return out2d.reshape(B, S, E)


# ---------------------- deterministic parameter setup -------------------------
def make_params(key):
    E, I = HIDDEN, INTER
    keys = jax.random.split(key, 16)

    def lin(kw, kb, din, dout):
        w = jax.random.normal(kw, (dout, din), jnp.float32) * 0.02   # torch (out,in)
        b = jax.random.normal(kb, (dout,), jnp.float32) * 0.02
        return w, b

    wq, bq = lin(keys[0], keys[6], E, E)
    wk, bk = lin(keys[1], keys[7], E, E)
    wv, bv = lin(keys[2], keys[8], E, E)
    wo, bo = lin(keys[3], keys[9], E, E)
    w1, b1 = lin(keys[4], keys[10], E, I)
    w2, b2 = lin(keys[5], keys[11], I, E)

    # nontrivial LayerNorm affines so gamma/beta paths are actually tested
    ln1_g = 1.0 + 0.1 * jax.random.normal(keys[12], (E,), jnp.float32)
    ln1_b = 0.05 * jax.random.normal(keys[13], (E,), jnp.float32)
    ln2_g = 1.0 + 0.1 * jax.random.normal(keys[14], (E,), jnp.float32)
    ln2_b = 0.05 * jax.random.normal(keys[15], (E,), jnp.float32)

    # fused QKV: pre-transpose to (in, out), concat along out, attention scale
    # folded into the q slice.
    wqkv = jnp.concatenate([wq.T * SCALE, wk.T, wv.T], axis=1)         # (E, 3E)
    bqkv = jnp.concatenate([bq * SCALE, bk, bv], axis=0)               # (3E,)

    # fold LayerNorm1 affine into the QKV matmul:
    #   (norm(x)*g1 + b1ln) @ W + c == norm(x) @ (diag(g1) W) + (b1ln @ W + c)
    wqkv_f = ln1_g[:, None] * wqkv
    bqkv_f = ln1_b @ wqkv + bqkv

    # fold LayerNorm2 affine into fc1 the same way.
    w1_t = w1.T                                                        # (E, I)
    w1_f = ln2_g[:, None] * w1_t
    b1_f = ln2_b @ w1_t + b1

    params = {
        "wqkv": wqkv_f,
        "bqkv": bqkv_f.reshape(1, 3 * E),
        "wo": wo.T,                                                    # (E, E)
        "bo": bo.reshape(1, E),
        "w1": w1_f,                                                    # (E, I)
        "b1": b1_f.reshape(1, I),
        "w2": w2.T,                                                    # (I, E)
        "b2": b2.reshape(1, E),
    }
    # torch-layout copies for the pure-JAX reference
    ref = dict(wq=wq, bq=bq, wk=wk, bk=bk, wv=wv, bv=bv, wo=wo, bo=bo,
               w1=w1, b1=b1, w2=w2, b2=b2,
               ln1_g=ln1_g, ln1_b=ln1_b, ln2_g=ln2_g, ln2_b=ln2_b)
    return params, ref


# ------------------------- pure-JAX reference ---------------------------------
def reference_forward(x, ref):
    def ln(v, g, b):
        mu = jnp.mean(v, -1, keepdims=True)
        var = jnp.mean((v - mu) ** 2, -1, keepdims=True)
        return (v - mu) / jnp.sqrt(var + EPS) * g + b

    B, S, E = x.shape
    xn = ln(x, ref["ln1_g"], ref["ln1_b"])
    q = xn @ ref["wq"].T + ref["bq"]
    k = xn @ ref["wk"].T + ref["bk"]
    v = xn @ ref["wv"].T + ref["bv"]
    q = q.reshape(B, S, NUM_HEADS, HEAD_DIM).transpose(0, 2, 1, 3)
    k = k.reshape(B, S, NUM_HEADS, HEAD_DIM).transpose(0, 2, 1, 3)
    v = v.reshape(B, S, NUM_HEADS, HEAD_DIM).transpose(0, 2, 1, 3)
    s = jnp.einsum("bhqd,bhkd->bhqk", q, k) * SCALE
    p = jax.nn.softmax(s, axis=-1)
    o = jnp.einsum("bhqk,bhkd->bhqd", p, v)
    o = o.transpose(0, 2, 1, 3).reshape(B, S, E)
    attn = o @ ref["wo"].T + ref["bo"]
    x1 = x + attn
    h = ln(x1, ref["ln2_g"], ref["ln2_b"]) @ ref["w1"].T + ref["b1"]
    c = 0.7978845608028654
    g = 0.5 * h * (1.0 + jnp.tanh(c * (h + 0.044715 * h ** 3)))
    mlp = g @ ref["w2"].T + ref["b2"]
    return x1 + mlp


# --------------------------------- main ----------------------------------------
if __name__ == "__main__":
    key = jax.random.PRNGKey(0)
    k_x, k_p = jax.random.split(key)
    x = jax.random.normal(k_x, (BATCH, SEQ, HIDDEN), jnp.float32)
    params, ref = make_params(k_p)

    out = siglip_encoder_layer(x, params)
    out = jax.block_until_ready(out)

    expected = reference_forward(x, ref)
    assert out.shape == (BATCH, SEQ, HIDDEN)
    assert jnp.allclose(out, expected, atol=1e-4, rtol=1e-4), (
        float(jnp.max(jnp.abs(out - expected))))
    print("KERNEL_OK")
</pallas_src>

<mosaic_0001>
module attributes {stable_mosaic.version = 11 : i64} {
  func.func @siglip_encoder_layer_kernel(%arg0: i32, %arg1: memref<16x32xf32, #tpu.memory_space<vmem>>, %arg2: memref<32x96xf32, #tpu.memory_space<vmem>>, %arg3: memref<1x96xf32, #tpu.memory_space<vmem>>, %arg4: memref<32x32xf32, #tpu.memory_space<vmem>>, %arg5: memref<1x32xf32, #tpu.memory_space<vmem>>, %arg6: memref<32x64xf32, #tpu.memory_space<vmem>>, %arg7: memref<1x64xf32, #tpu.memory_space<vmem>>, %arg8: memref<64x32xf32, #tpu.memory_space<vmem>>, %arg9: memref<1x32xf32, #tpu.memory_space<vmem>>, %arg10: memref<16x32xf32, #tpu.memory_space<vmem>>) attributes {dimension_semantics = [#tpu.dimension_semantics<arbitrary>], iteration_bounds = array<i64: 1>, scalar_prefetch = 0 : i64, scratch_operands = 0 : i64, tpu.core_type = #tpu.core_type<tc>, window_params = [{pipeline_mode = #tpu.pipeline_mode<synchronous>, transform_indices = @transform_0, window_bounds = array<i64: 16, 32>}, {pipeline_mode = #tpu.pipeline_mode<synchronous>, transform_indices = @transform_1, window_bounds = array<i64: 32, 96>}, {pipeline_mode = #tpu.pipeline_mode<synchronous>, transform_indices = @transform_2, window_bounds = array<i64: 1, 96>}, {pipeline_mode = #tpu.pipeline_mode<synchronous>, transform_indices = @transform_3, window_bounds = array<i64: 32, 32>}, {pipeline_mode = #tpu.pipeline_mode<synchronous>, transform_indices = @transform_4, window_bounds = array<i64: 1, 32>}, {pipeline_mode = #tpu.pipeline_mode<synchronous>, transform_indices = @transform_5, window_bounds = array<i64: 32, 64>}, {pipeline_mode = #tpu.pipeline_mode<synchronous>, transform_indices = @transform_6, window_bounds = array<i64: 1, 64>}, {pipeline_mode = #tpu.pipeline_mode<synchronous>, transform_indices = @transform_7, window_bounds = array<i64: 64, 32>}, {pipeline_mode = #tpu.pipeline_mode<synchronous>, transform_indices = @transform_8, window_bounds = array<i64: 1, 32>}, {pipeline_mode = #tpu.pipeline_mode<synchronous>, transform_indices = @transform_9, window_bounds = array<i64: 16, 32>}]} {
    %c0 = arith.constant 0 : index
    %c0_0 = arith.constant 0 : index
    %0 = vector.load %arg1[%c0, %c0_0] : memref<16x32xf32, #tpu.memory_space<vmem>>, vector<16x32xf32>
    %cst = arith.constant dense<0.000000e+00> : vector<16xf32>
    %1 = vector.multi_reduction <add>, %0, %cst [1] : vector<16x32xf32> to vector<16xf32>
    %2 = vector.shape_cast %1 : vector<16xf32> to vector<16x1xf32>
    %cst_1 = arith.constant 3.200000e+01 : f32
    %3 = vector.broadcast %cst_1 : f32 to vector<16x1xf32>
    %4 = arith.divf %2, %3 : vector<16x1xf32>
    %5 = vector.broadcast %4 : vector<16x1xf32> to vector<16x32xf32>
    %6 = arith.subf %0, %5 : vector<16x32xf32>
    %7 = arith.mulf %6, %6 : vector<16x32xf32>
    %cst_2 = arith.constant dense<0.000000e+00> : vector<16xf32>
    %8 = vector.multi_reduction <add>, %7, %cst_2 [1] : vector<16x32xf32> to vector<16xf32>
    %9 = vector.shape_cast %8 : vector<16xf32> to vector<16x1xf32>
    %cst_3 = arith.constant 3.200000e+01 : f32
    %10 = vector.broadcast %cst_3 : f32 to vector<16x1xf32>
    %11 = arith.divf %9, %10 : vector<16x1xf32>
    %12 = vector.broadcast %4 : vector<16x1xf32> to vector<16x32xf32>
    %13 = arith.subf %0, %12 : vector<16x32xf32>
    %cst_4 = arith.constant 9.99999997E-7 : f32
    %14 = vector.broadcast %cst_4 : f32 to vector<16x1xf32>
    %15 = arith.addf %11, %14 : vector<16x1xf32>
    %16 = math.rsqrt %15 : vector<16x1xf32>
    %17 = vector.broadcast %16 : vector<16x1xf32> to vector<16x32xf32>
    %18 = arith.mulf %13, %17 : vector<16x32xf32>
    %c0_5 = arith.constant 0 : index
    %c0_6 = arith.constant 0 : index
    %19 = vector.load %arg2[%c0_5, %c0_6] : memref<32x96xf32, #tpu.memory_space<vmem>>, vector<32x96xf32>
    %cst_7 = arith.constant dense<0.000000e+00> : vector<16x96xf32>
    %20 = tpu.matmul %18, %19, %cst_7 {dimension_numbers = #tpu.dot_dimension_numbers<[1], [0], [0], [1], [0, 0, 1, 1], [], []>} : vector<16x32xf32>, vector<32x96xf32>, vector<16x96xf32> -> vector<16x96xf32>
    %c0_8 = arith.constant 0 : index
    %c0_9 = arith.constant 0 : index
    %21 = vector.load %arg3[%c0_8, %c0_9] : memref<1x96xf32, #tpu.memory_space<vmem>>, vector<1x96xf32>
    %22 = vector.broadcast %21 : vector<1x96xf32> to vector<16x96xf32>
    %23 = arith.addf %20, %22 : vector<16x96xf32>
    %24 = vector.extract_strided_slice %23 {offsets = [0, 0], sizes = [16, 32], strides = [1, 1]} : vector<16x96xf32> to vector<16x32xf32>
    %25 = vector.extract_strided_slice %23 {offsets = [0, 32], sizes = [16, 32], strides = [1, 1]} : vector<16x96xf32> to vector<16x32xf32>
    %26 = vector.extract_strided_slice %23 {offsets = [0, 64], sizes = [16, 32], strides = [1, 1]} : vector<16x96xf32> to vector<16x32xf32>
    %27 = vector.extract_strided_slice %24 {offsets = [0, 0], sizes = [16, 8], strides = [1, 1]} : vector<16x32xf32> to vector<16x8xf32>
    %28 = vector.shape_cast %27 : vector<16x8xf32> to vector<2x8x8xf32>
    %29 = vector.extract_strided_slice %24 {offsets = [0, 8], sizes = [16, 8], strides = [1, 1]} : vector<16x32xf32> to vector<16x8xf32>
    %30 = vector.shape_cast %29 : vector<16x8xf32> to vector<2x8x8xf32>
    %31 = vector.extract_strided_slice %24 {offsets = [0, 16], sizes = [16, 8], strides = [1, 1]} : vector<16x32xf32> to vector<16x8xf32>
    %32 = vector.shape_cast %31 : vector<16x8xf32> to vector<2x8x8xf32>
    %33 = vector.extract_strided_slice %24 {offsets = [0, 24], sizes = [16, 8], strides = [1, 1]} : vector<16x32xf32> to vector<16x8xf32>
    %34 = vector.shape_cast %33 : vector<16x8xf32> to vector<2x8x8xf32>
    %35 = tpu.concatenate %28, %30, %32, %34 in 0 : vector<2x8x8xf32>, vector<2x8x8xf32>, vector<2x8x8xf32>, vector<2x8x8xf32> -> vector<8x8x8xf32>
    %36 = vector.extract_strided_slice %25 {offsets = [0, 0], sizes = [16, 8], strides = [1, 1]} : vector<16x32xf32> to vector<16x8xf32>
    %37 = vector.shape_cast %36 : vector<16x8xf32> to vector<2x8x8xf32>
    %38 = vector.extract_strided_slice %25 {offsets = [0, 8], sizes = [16, 8], strides = [1, 1]} : vector<16x32xf32> to vector<16x8xf32>
    %39 = vector.shape_cast %38 : vector<16x8xf32> to vector<2x8x8xf32>
    %40 = vector.extract_strided_slice %25 {offsets = [0, 16], sizes = [16, 8], strides = [1, 1]} : vector<16x32xf32> to vector<16x8xf32>
    %41 = vector.shape_cast %40 : vector<16x8xf32> to vector<2x8x8xf32>
    %42 = vector.extract_strided_slice %25 {offsets = [0, 24], sizes = [16, 8], strides = [1, 1]} : vector<16x32xf32> to vector<16x8xf32>
    %43 = vector.shape_cast %42 : vector<16x8xf32> to vector<2x8x8xf32>
    %44 = tpu.concatenate %37, %39, %41, %43 in 0 : vector<2x8x8xf32>, vector<2x8x8xf32>, vector<2x8x8xf32>, vector<2x8x8xf32> -> vector<8x8x8xf32>
    %45 = vector.extract_strided_slice %26 {offsets = [0, 0], sizes = [16, 8], strides = [1, 1]} : vector<16x32xf32> to vector<16x8xf32>
    %46 = vector.shape_cast %45 : vector<16x8xf32> to vector<2x8x8xf32>
    %47 = vector.extract_strided_slice %26 {offsets = [0, 8], sizes = [16, 8], strides = [1, 1]} : vector<16x32xf32> to vector<16x8xf32>
    %48 = vector.shape_cast %47 : vector<16x8xf32> to vector<2x8x8xf32>
    %49 = vector.extract_strided_slice %26 {offsets = [0, 16], sizes = [16, 8], strides = [1, 1]} : vector<16x32xf32> to vector<16x8xf32>
    %50 = vector.shape_cast %49 : vector<16x8xf32> to vector<2x8x8xf32>
    %51 = vector.extract_strided_slice %26 {offsets = [0, 24], sizes = [16, 8], strides = [1, 1]} : vector<16x32xf32> to vector<16x8xf32>
    %52 = vector.shape_cast %51 : vector<16x8xf32> to vector<2x8x8xf32>
    %53 = tpu.concatenate %46, %48, %50, %52 in 0 : vector<2x8x8xf32>, vector<2x8x8xf32>, vector<2x8x8xf32>, vector<2x8x8xf32> -> vector<8x8x8xf32>
    "tpu.trace_start"() <{level = 10 : i32, message = "nqd,nkd->nqk"}> : () -> ()
    %cst_10 = arith.constant dense<0.000000e+00> : vector<8x8x8xf32>
    %54 = tpu.matmul %35, %44, %cst_10 {dimension_numbers = #tpu.dot_dimension_numbers<[2], [2], [1], [1], [0, 0, 0, 1, 1, 1], [0], [0]>} : vector<8x8x8xf32>, vector<8x8x8xf32>, vector<8x8x8xf32> -> vector<8x8x8xf32>
    "tpu.trace_stop"() : () -> ()
    %cst_11 = arith.constant dense<0xFF800000> : vector<8x8xf32>
    %55 = vector.multi_reduction <maximumf>, %54, %cst_11 [2] : vector<8x8x8xf32> to vector<8x8xf32>
    %56 = vector.shape_cast %55 : vector<8x8xf32> to vector<8x8x1xf32>
    %57 = vector.broadcast %56 : vector<8x8x1xf32> to vector<8x8x8xf32>
    %58 = arith.subf %54, %57 : vector<8x8x8xf32>
    %59 = math.exp %58 : vector<8x8x8xf32>
    %cst_12 = arith.constant dense<0.000000e+00> : vector<8x8xf32>
    %60 = vector.multi_reduction <add>, %59, %cst_12 [2] : vector<8x8x8xf32> to vector<8x8xf32>
    %61 = vector.shape_cast %60 : vector<8x8xf32> to vector<8x8x1xf32>
    %62 = tpu.reciprocal %61 {approx = true} : vector<8x8x1xf32> -> vector<8x8x1xf32>
    %63 = vector.broadcast %62 : vector<8x8x1xf32> to vector<8x8x8xf32>
    %64 = arith.mulf %59, %63 : vector<8x8x8xf32>
    "tpu.trace_start"() <{level = 10 : i32, message = "nqk,nkd->nqd"}> : () -> ()
    %cst_13 = arith.constant dense<0.000000e+00> : vector<8x8x8xf32>
    %65 = tpu.matmul %64, %53, %cst_13 {dimension_numbers = #tpu.dot_dimension_numbers<[2], [1], [1], [2], [0, 0, 0, 1, 1, 2], [0], [0]>} : vector<8x8x8xf32>, vector<8x8x8xf32>, vector<8x8x8xf32> -> vector<8x8x8xf32>
    "tpu.trace_stop"() : () -> ()
    %66 = vector.extract_strided_slice %65 {offsets = [0, 0, 0], sizes = [2, 8, 8], strides = [1, 1, 1]} : vector<8x8x8xf32> to vector<2x8x8xf32>
    %67 = vector.shape_cast %66 : vector<2x8x8xf32> to vector<16x8xf32>
    %68 = vector.extract_strided_slice %65 {offsets = [2, 0, 0], sizes = [2, 8, 8], strides = [1, 1, 1]} : vector<8x8x8xf32> to vector<2x8x8xf32>
    %69 = vector.shape_cast %68 : vector<2x8x8xf32> to vector<16x8xf32>
    %70 = vector.extract_strided_slice %65 {offsets = [4, 0, 0], sizes = [2, 8, 8], strides = [1, 1, 1]} : vector<8x8x8xf32> to vector<2x8x8xf32>
    %71 = vector.shape_cast %70 : vector<2x8x8xf32> to vector<16x8xf32>
    %72 = vector.extract_strided_slice %65 {offsets = [6, 0, 0], sizes = [2, 8, 8], strides = [1, 1, 1]} : vector<8x8x8xf32> to vector<2x8x8xf32>
    %73 = vector.shape_cast %72 : vector<2x8x8xf32> to vector<16x8xf32>
    %74 = tpu.concatenate %67, %69, %71, %73 in 1 : vector<16x8xf32>, vector<16x8xf32>, vector<16x8xf32>, vector<16x8xf32> -> vector<16x32xf32>
    %c0_14 = arith.constant 0 : index
    %c0_15 = arith.constant 0 : index
    %75 = vector.load %arg4[%c0_14, %c0_15] : memref<32x32xf32, #tpu.memory_space<vmem>>, vector<32x32xf32>
    %cst_16 = arith.constant dense<0.000000e+00> : vector<16x32xf32>
    %76 = tpu.matmul %74, %75, %cst_16 {dimension_numbers = #tpu.dot_dimension_numbers<[1], [0], [0], [1], [0, 0, 1, 1], [], []>} : vector<16x32xf32>, vector<32x32xf32>, vector<16x32xf32> -> vector<16x32xf32>
    %c0_17 = arith.constant 0 : index
    %c0_18 = arith.constant 0 : index
    %77 = vector.load %arg5[%c0_17, %c0_18] : memref<1x32xf32, #tpu.memory_space<vmem>>, vector<1x32xf32>
    %78 = vector.broadcast %77 : vector<1x32xf32> to vector<16x32xf32>
    %79 = arith.addf %76, %78 : vector<16x32xf32>
    %80 = arith.addf %0, %79 : vector<16x32xf32>
    %cst_19 = arith.constant dense<0.000000e+00> : vector<16xf32>
    %81 = vector.multi_reduction <add>, %80, %cst_19 [1] : vector<16x32xf32> to vector<16xf32>
    %82 = vector.shape_cast %81 : vector<16xf32> to vector<16x1xf32>
    %cst_20 = arith.constant 3.200000e+01 : f32
    %83 = vector.broadcast %cst_20 : f32 to vector<16x1xf32>
    %84 = arith.divf %82, %83 : vector<16x1xf32>
    %85 = vector.broadcast %84 : vector<16x1xf32> to vector<16x32xf32>
    %86 = arith.subf %80, %85 : vector<16x32xf32>
    %87 = arith.mulf %86, %86 : vector<16x32xf32>
    %cst_21 = arith.constant dense<0.000000e+00> : vector<16xf32>
    %88 = vector.multi_reduction <add>, %87, %cst_21 [1] : vector<16x32xf32> to vector<16xf32>
    %89 = vector.shape_cast %88 : vector<16xf32> to vector<16x1xf32>
    %cst_22 = arith.constant 3.200000e+01 : f32
    %90 = vector.broadcast %cst_22 : f32 to vector<16x1xf32>
    %91 = arith.divf %89, %90 : vector<16x1xf32>
    %92 = vector.broadcast %84 : vector<16x1xf32> to vector<16x32xf32>
    %93 = arith.subf %80, %92 : vector<16x32xf32>
    %cst_23 = arith.constant 9.99999997E-7 : f32
    %94 = vector.broadcast %cst_23 : f32 to vector<16x1xf32>
    %95 = arith.addf %91, %94 : vector<16x1xf32>
    %96 = math.rsqrt %95 : vector<16x1xf32>
    %97 = vector.broadcast %96 : vector<16x1xf32> to vector<16x32xf32>
    %98 = arith.mulf %93, %97 : vector<16x32xf32>
    %c0_24 = arith.constant 0 : index
    %c0_25 = arith.constant 0 : index
    %99 = vector.load %arg6[%c0_24, %c0_25] : memref<32x64xf32, #tpu.memory_space<vmem>>, vector<32x64xf32>
    %cst_26 = arith.constant dense<0.000000e+00> : vector<16x64xf32>
    %100 = tpu.matmul %98, %99, %cst_26 {dimension_numbers = #tpu.dot_dimension_numbers<[1], [0], [0], [1], [0, 0, 1, 1], [], []>} : vector<16x32xf32>, vector<32x64xf32>, vector<16x64xf32> -> vector<16x64xf32>
    %c0_27 = arith.constant 0 : index
    %c0_28 = arith.constant 0 : index
    %101 = vector.load %arg7[%c0_27, %c0_28] : memref<1x64xf32, #tpu.memory_space<vmem>>, vector<1x64xf32>
    %102 = vector.broadcast %101 : vector<1x64xf32> to vector<16x64xf32>
    %103 = arith.addf %100, %102 : vector<16x64xf32>
    %cst_29 = arith.constant 5.000000e-01 : f32
    %104 = vector.broadcast %cst_29 : f32 to vector<16x64xf32>
    %105 = arith.mulf %104, %103 : vector<16x64xf32>
    %cst_30 = arith.constant 4.471500e-02 : f32
    %106 = vector.broadcast %cst_30 : f32 to vector<16x64xf32>
    %107 = arith.mulf %106, %103 : vector<16x64xf32>
    %108 = arith.mulf %107, %103 : vector<16x64xf32>
    %109 = arith.mulf %108, %103 : vector<16x64xf32>
    %110 = arith.addf %103, %109 : vector<16x64xf32>
    %cst_31 = arith.constant 0.797884583 : f32
    %111 = vector.broadcast %cst_31 : f32 to vector<16x64xf32>
    %112 = arith.mulf %111, %110 : vector<16x64xf32>
    %113 = math.tanh %112 : vector<16x64xf32>
    %cst_32 = arith.constant 1.000000e+00 : f32
    %114 = vector.broadcast %cst_32 : f32 to vector<16x64xf32>
    %115 = arith.addf %114, %113 : vector<16x64xf32>
    %116 = arith.mulf %105, %115 : vector<16x64xf32>
    %c0_33 = arith.constant 0 : index
    %c0_34 = arith.constant 0 : index
    %117 = vector.load %arg8[%c0_33, %c0_34] : memref<64x32xf32, #tpu.memory_space<vmem>>, vector<64x32xf32>
    %cst_35 = arith.constant dense<0.000000e+00> : vector<16x32xf32>
    %118 = tpu.matmul %116, %117, %cst_35 {dimension_numbers = #tpu.dot_dimension_numbers<[1], [0], [0], [1], [0, 0, 1, 1], [], []>} : vector<16x64xf32>, vector<64x32xf32>, vector<16x32xf32> -> vector<16x32xf32>
    %c0_36 = arith.constant 0 : index
    %c0_37 = arith.constant 0 : index
    %119 = vector.load %arg9[%c0_36, %c0_37] : memref<1x32xf32, #tpu.memory_space<vmem>>, vector<1x32xf32>
    %120 = vector.broadcast %119 : vector<1x32xf32> to vector<16x32xf32>
    %121 = arith.addf %118, %120 : vector<16x32xf32>
    %122 = arith.addf %80, %121 : vector<16x32xf32>
    %c0_38 = arith.constant 0 : index
    %c0_39 = arith.constant 0 : index
    %123 = vector.load %arg10[%c0_38, %c0_39] : memref<16x32xf32, #tpu.memory_space<vmem>>, vector<16x32xf32>
    tpu.vector_store %arg10[%c0_38, %c0_39], %122 {strides = array<i32>} : memref<16x32xf32, #tpu.memory_space<vmem>>, vector<16x32xf32>,
    return
  }
  func.func @transform_0(%arg0: i32) -> (i32, i32) {
    %c0_i32 = arith.constant 0 : i32
    %c0_i32_0 = arith.constant 0 : i32
    %c0_i32_1 = arith.constant 0 : i32
    return %c0_i32, %c0_i32_0 : i32, i32
  }
  func.func @transform_1(%arg0: i32) -> (i32, i32) {
    %c0_i32 = arith.constant 0 : i32
    %c0_i32_0 = arith.constant 0 : i32
    %c0_i32_1 = arith.constant 0 : i32
    return %c0_i32, %c0_i32_0 : i32, i32
  }
  func.func @transform_2(%arg0: i32) -> (i32, i32) {
    %c0_i32 = arith.constant 0 : i32
    %c0_i32_0 = arith.constant 0 : i32
    %c0_i32_1 = arith.constant 0 : i32
    return %c0_i32, %c0_i32_0 : i32, i32
  }
  func.func @transform_3(%arg0: i32) -> (i32, i32) {
    %c0_i32 = arith.constant 0 : i32
    %c0_i32_0 = arith.constant 0 : i32
    %c0_i32_1 = arith.constant 0 : i32
    return %c0_i32, %c0_i32_0 : i32, i32
  }
  func.func @transform_4(%arg0: i32) -> (i32, i32) {
    %c0_i32 = arith.constant 0 : i32
    %c0_i32_0 = arith.constant 0 : i32
    %c0_i32_1 = arith.constant 0 : i32
    return %c0_i32, %c0_i32_0 : i32, i32
  }
  func.func @transform_5(%arg0: i32) -> (i32, i32) {
    %c0_i32 = arith.constant 0 : i32
    %c0_i32_0 = arith.constant 0 : i32
    %c0_i32_1 = arith.constant 0 : i32
    return %c0_i32, %c0_i32_0 : i32, i32
  }
  func.func @transform_6(%arg0: i32) -> (i32, i32) {
    %c0_i32 = arith.constant 0 : i32
    %c0_i32_0 = arith.constant 0 : i32
    %c0_i32_1 = arith.constant 0 : i32
    return %c0_i32, %c0_i32_0 : i32, i32
  }
  func.func @transform_7(%arg0: i32) -> (i32, i32) {
    %c0_i32 = arith.constant 0 : i32
    %c0_i32_0 = arith.constant 0 : i32
    %c0_i32_1 = arith.constant 0 : i32
    return %c0_i32, %c0_i32_0 : i32, i32
  }
  func.func @transform_8(%arg0: i32) -> (i32, i32) {
    %c0_i32 = arith.constant 0 : i32
    %c0_i32_0 = arith.constant 0 : i32
    %c0_i32_1 = arith.constant 0 : i32
    return %c0_i32, %c0_i32_0 : i32, i32
  }
  func.func @transform_9(%arg0: i32) -> (i32, i32) {
    %c0_i32 = arith.constant 0 : i32
    %c0_i32_0 = arith.constant 0 : i32
    %c0_i32_1 = arith.constant 0 : i32
    return %c0_i32, %c0_i32_0 : i32, i32
  }
}

</mosaic_0001>

<bundles_post_ra>
// kernel: tpu_custom_call.1
= control target key start
LH: loop header
LB: loop body
LE: loop exit
PB: predicated region body
PF: predicated region fallthrough
CT: control target
= control target key end

     0   :  { %14 = vsyncpa [#allocation3], 0  ;;  %s2604_s0 = inlined_call_operand.hbm [shape: f32[16,32], index: 0, kind: input, shape index: {}]   ;;  %s2605_s1 = inlined_call_operand.vmem [shape: f32[32,96], index: 1, kind: input, shape index: {}]   ;;  %s2606_s2 = inlined_call_operand.vmem [shape: f32[1,96], index: 2, kind: input, shape index: {}]   ;;  %s2607_s3 = inlined_call_operand.vmem [shape: f32[32,32], index: 3, kind: input, shape index: {}]   ;;  %s2608_s4 = inlined_call_operand.vmem [shape: f32[1,32], index: 4, kind: input, shape index: {}]   ;;  %s2609_s5 = inlined_call_operand.vmem [shape: f32[32,64], index: 5, kind: input, shape index: {}]   ;;  %s2610_s6 = inlined_call_operand.vmem [shape: f32[1,64], index: 6, kind: input, shape index: {}]   ;;  %s2611_s7 = inlined_call_operand.vmem [shape: f32[64,32], index: 7, kind: input, shape index: {}]   ;;  %s2612_s8 = inlined_call_operand.vmem [shape: f32[1,32], index: 8, kind: input, shape index: {}]   ;;  %s2613_s9 = inlined_call_operand.hbm [shape: f32[16,32], index: 9, kind: output, shape index: {}]  }
   0x1   :  { %15 = vsyncpa [#allocation4], 0  ;;  %s2241_s30 = smov [#allocation2]   ;;  %s2193_s13 = scalar_lea.hbm %s2604_s0, 256 }
   0x2   :  { %s21_s10 = sshll.u32 %s2241_s30, 4  ;;  %p2194_p0 = scmp.ne.s32.totalorder %s2604_s0, %s2193_s13  ;;  %s22_s10 = int_to_ptr.vmem [resolvable:$true] %s21_s10 }
   0x3   :  { %p2197_p1 = scmp.lt.u32.totalorder %s2193_s13, %s2604_s0 }
   0x5   :  { %p2199_p2 = pnand %p2197_p1, %p2194_p0 }
   0x7   :  { %2202 = shalt.err (!%p2199_p2)
}
   0x8   :  { %s2203_s18 = scalar_lea.vmem %s22_s10, 256  ;;  %p2208_p4 = scmp.lt.s32.totalorder %s22_s10, %s22_s10 }
   0x9   :  { %p2204_p3 = scmp.ne.s32.totalorder %s22_s10, %s2203_s18  ;;  %p2209_p5 = scmp.lt.s32.totalorder %s2203_s18, %s2203_s18 }
   0xb   :  { %p2210_p6 = por %p2209_p5, %p2208_p4 }
   0xd   :  { %p2211_p7 = pnand %p2210_p6, %p2204_p3 }
   0xf   :  { %2214 = shalt.err (!%p2211_p7)
}
  0x10   :  { %s2242_s19 = smov 128   ;;  %s2243_s20 = smov 8  }
  0x11   :  { %27 = dma.hbm_to_vmem [thread:$0]  %s2604_s0, 256, %s22_s10, [#allocation3], %s2242_s19, %s2242_s19, %s2243_s20  }
  0x12   :  { %2237 = dma.done.wait [#allocation3], 256  }
  0x13   :  { %2238 = vsyncadd [#allocation3], 4294967040  ;;  %vm49_vm0 = vcmask 261120   ;;  %v2319_v0 = vld [vmem:[#allocation2] sm:$0xff]  ;;  %v2321_v1 = vld [vmem:[#allocation2 + $0x8] sm:$0xff]  ;;  %v2244_v31 = vmov 0.0  }
  0x14   :  { %v50_v2 = vsel %vm49_vm0, %v2319_v0, 0.0  ;;  %v53_v3 = vsel %vm49_vm0, %v2321_v1, 0.0  ;;  %v77_v14 = vld [vmem:[%s2605_s1] sm:$0xff]  ;;  %v78_v15 = vld [vmem:[%s2605_s1 + $0x8] sm:$0xff]  ;;  %v79_v16 = vld [vmem:[%s2605_s1 + $0x10] sm:$0xff]  ;;  %1985 = vmatprep.subr.mxu0 %v2244_v31  ;;  %vm2245_vm1 = vmmov 0  }
  0x15   :  { %51 = vadd.xlane.f32.xlu0 %v50_v2  ;;  %v2096_v17 = vpack.c.bf16 %v78_v15, %v77_v14  ;;  %v80_v18 = vld [vmem:[%s2605_s1 + $0x18] sm:$0xff]  ;;  %v1868_v30 = vld [vmem:[%s2606_s2] ss:$0 sm:$0xff]  ;;  %1987 = vmatprep.mubr.msk.f32.mxu0 %vm2245_vm1, %v2244_v31  ;;  %s2246_s10 = smov 120   ;;  %s2247_s2 = smov 112   ;;  %vm185_vm2 = vcmask 64512  }
  0x16   :  { %v2100_v19 = vpack.c.bf16 %v80_v18, %v79_v16  ;;  %s2248_s11 = smov 104   ;;  %s2249_s12 = smov 96   ;;  %vm1514_vm3 = vcmask 130048   ;;  %vm1517_vm4 = vcmask 195584   ;;  %vm1765_vm5 = vcmask 523264  }
  0x17   :  { %2097 = vmatprep.subr.bf16.mxu1 %v2096_v17  ;;  %s2250_s13 = smov 64   ;;  %s2251_s23 = smov 16  }
  0x18   :  { %2099 = vmatpush3.bf16.msra.mxu1 %v2096_v17  ;;  %s2253_s26 = smov [#allocation5]  }
  0x19   :  { %54 = vadd.xlane.f32.xlu0 %v53_v3  ;;  %2101 = vmatprep.subr.bf16.mxu1 %v2100_v19  ;;  %s1856_s27 = sshll.u32 %s2253_s26, 4  ;;  %s1857_s27 = int_to_ptr.vmem [resolvable:$true] %s1856_s27 }
  0x1a   :  { %s2215_s28 = scalar_lea.vmem %s1857_s27, 256  ;;  %p2220_p9 = scmp.lt.s32.totalorder %s1857_s27, %s1857_s27 }
  0x1b   :  { %p2216_p8 = scmp.ne.s32.totalorder %s1857_s27, %s2215_s28  ;;  %p2221_p10 = scmp.lt.s32.totalorder %s2215_s28, %s2215_s28 }
  0x1c   :  { %2103 = vmatpush3.bf16.msra.mxu1 %v2100_v19 }
  0x1d   :  { %1975 = vmatprep.subr.mxu1 %v2244_v31  ;;  %p2222_p11 = por %p2221_p10, %p2220_p9 }
  0x1f   :  { %p2223_p12 = pnand %p2222_p11, %p2216_p8 }
  0xa2   :  { %v52_v4 = vpop.xlane.xlu0 %51 }
  0xa3   :  { %v57_v5 = vmul.f32 0.03125, %v52_v4 }
  0xa5   :  { %v59_v6 = vsub.f32 %v2319_v0, %v57_v5 }
  0xa6   :  { %v55_v7 = vpop.xlane.xlu0 %54 }
  0xa7   :  { %v58_v8 = vmul.f32 0.03125, %v55_v7  ;;  %v61_v9 = vmul.f32 %v59_v6, %v59_v6 }
  0xa9   :  { %v60_v10 = vsub.f32 %v2321_v1, %v58_v8  ;;  %v63_v11 = vsel %vm49_vm0, %v61_v9, 0.0 }
  0xaa   :  { %64 = vadd.xlane.f32.xlu1 %v63_v11 }
  0xab   :  { %v62_v12 = vmul.f32 %v60_v10, %v60_v10 }
  0xad   :  { %v66_v13 = vsel %vm49_vm0, %v62_v12, 0.0 }
  0xae   :  { %67 = vadd.xlane.f32.xlu1 %v66_v13 }
 0x137   :  { %v65_v20 = vpop.xlane.xlu1 %64 }
 0x138   :  { %v69_v21 = vmul.f32 0.03125, %v65_v20 }
 0x13a   :  { %v71_v22 = vadd.f32 1e-06, %v69_v21 }
 0x13b   :  { %v68_v23 = vpop.xlane.xlu1 %67 }
 0x13c   :  { %2149 = vrsqrt.f32 %v71_v22  ;;  %v70_v24 = vmul.f32 0.03125, %v68_v23 }
 0x13e   :  { %v72_v25 = vadd.f32 1e-06, %v70_v24 }
 0x140   :  { %2151 = vrsqrt.f32 %v72_v25 }
 0x146   :  { %v2150_v26 = vpop.eup %2149 }
 0x147   :  { %v75_v27 = vmul.f32 %v2150_v26, %v59_v6 }
 0x149   :  { %1972 = vmatprep.mubr.msk.f32.mxu1 %vm49_vm0, %v75_v27 }
 0x14a   :  { %v2152_v28 = vpop.eup %2151 }
 0x14b   :  { %v76_v29 = vmul.f32 %v2152_v28, %v60_v10 }
 0x14d   :  { %1973 = vmatmul.mubr.msk.f32.vlgmr.msra.gmra.mrb[0].mxu1 %vm49_vm0, %v76_v29 }
 0x14e   :  { %1977 = vmatprep.mubr.msk.f32.mxu1 %vm2245_vm1, %v2244_v31 }
 0x220   :  { %v1974_v32 = vpop.f32.mrb[0].mxu1 }
 0x221   :  { %v2354_v33 = vadd.f32 %v1974_v32, %v1868_v30  ;;  %v160_v34 = vpop.f32.mrb[1].mxu1 }
 0x222   :  { %v2356_v35 = vadd.f32 %v1868_v30, %v160_v34 }
 0x223   :  { %173 = vrot.lane.b32.xlu1 %v2354_v33, %s2246_s10 }
 0x224   :  { %171 = vrot.lane.b32.xlu0 %v2356_v35, %s2246_s10 }
 0x227   :  { %175 = vrot.lane.b32.xlu1 %v2356_v35, %s2247_s2 }
 0x228   :  { %179 = vrot.lane.b32.xlu0 %v2356_v35, %s2248_s11 }
 0x22b   :  { %177 = vrot.lane.b32.xlu1 %v2354_v33, %s2247_s2 }
 0x22c   :  { %183 = vrot.lane.b32.xlu0 %v2356_v35, %s2249_s12 }
 0x22f   :  { %181 = vrot.lane.b32.xlu1 %v2354_v33, %s2248_s11 }
 0x233   :  { %260 = vrot.lane.b32.xlu1 %v2354_v33, %s2249_s12 }
 0x295   :  { %v2366_v36 = vpop.permute.xlu1 %173 }
 0x296   :  { %412 = vrot.lane.b32.xlu1 %v2366_v36, %s2249_s12  ;;  %v2369_v37 = vpop.permute.xlu0 %171 }
 0x297   :  { %336 = vrot.lane.b32.xlu0 %v2369_v37, %s2249_s12 }
 0x299   :  { %v2372_v38 = vpop.permute.xlu1 %175 }
 0x29a   :  { %v2374_v39 = vpop.permute.xlu0 %179 }
 0x29b   :  { %488 = vrot.lane.b32.xlu0 %v2372_v38, %s2249_s12 }
 0x29d   :  { %v2377_v40 = vpop.permute.xlu1 %177 }
 0x29e   :  { %564 = vrot.lane.b32.xlu1 %v2377_v40, %s2249_s12  ;;  %v184_v41 = vpop.permute.xlu0 %183 }
 0x29f   :  { %640 = vrot.lane.b32.xlu0 %v2374_v39, %s2249_s12  ;;  %1976 = vmatpush3.xpose.msk.msra.mxu1 %vm185_vm2, %v184_v41 }
 0x2a0   :  { %1980 = vmatprep.subr.mxu1 %v2244_v31 }
 0x2a1   :  { %v2383_v42 = vpop.permute.xlu1 %181 }
 0x2a2   :  { %716 = vrot.lane.b32.xlu1 %v2383_v42, %s2249_s12  ;;  %1978 = vmatmul.mubr.msk.f32.vlgmr.msra.gmra.mrb[2].mxu1 %vm185_vm2, %v2356_v35 }
 0x2a3   :  { %1982 = vmatprep.mubr.msk.f32.mxu1 %vm2245_vm1, %v2244_v31 }
 0x2a5   :  { %v261_v43 = vpop.permute.xlu1 %260 }
 0x2a6   :  { %1981 = vmatpush3.xpose.msk.msra.mxu1 %vm185_vm2, %v261_v43 }
 0x2a7   :  { %1990 = vmatprep.subr.mxu1 %v2244_v31 }
 0x2a9   :  { %1983 = vmatmul.mubr.msk.f32.vlgmr.msra.gmra.mrb[4].mxu1 %vm185_vm2, %v2354_v33 }
 0x2aa   :  { %1992 = vmatprep.mubr.msk.f32.mxu1 %vm2245_vm1, %v2244_v31 }
 0x308   :  { %v413_v44 = vpop.permute.xlu1 %412 }
 0x309   :  { %1991 = vmatpush3.xpose.msk.msra.mxu1 %vm185_vm2, %v413_v44  ;;  %v337_v45 = vpop.permute.xlu0 %336 }
 0x30a   :  { %1986 = vmatpush3.xpose.msk.msra.mxu0 %vm185_vm2, %v337_v45  ;;  %2000 = vmatprep.subr.mxu1 %v2244_v31 }
 0x30b   :  { %1995 = vmatprep.subr.mxu0 %v2244_v31 }
 0x30c   :  { %1993 = vmatmul.mubr.msk.f32.vlgmr.msra.gmra.mrb[6].mxu1 %vm185_vm2, %v2366_v36 }
 0x30d   :  { %1988 = vmatmul.mubr.msk.f32.vlgmr.msra.gmra.mrb[0].mxu0 %vm185_vm2, %v2369_v37  ;;  %v489_v46 = vpop.permute.xlu0 %488  ;;  %2002 = vmatprep.mubr.msk.f32.mxu1 %vm2245_vm1, %v2244_v31 }
 0x30e   :  { %1996 = vmatpush3.xpose.msk.msra.mxu0 %vm185_vm2, %v489_v46  ;;  %1997 = vmatprep.mubr.msk.f32.mxu0 %vm2245_vm1, %v2244_v31 }
 0x30f   :  { %2005 = vmatprep.subr.mxu0 %v2244_v31 }
 0x310   :  { %v565_v47 = vpop.permute.xlu1 %564 }
 0x311   :  { %1998 = vmatmul.mubr.msk.f32.vlgmr.msra.gmra.mrb[2].mxu0 %vm185_vm2, %v2372_v38  ;;  %2001 = vmatpush3.xpose.msk.msra.mxu1 %vm185_vm2, %v565_v47  ;;  %v641_v48 = vpop.permute.xlu0 %640 }
 0x312   :  { %2006 = vmatpush3.xpose.msk.msra.mxu0 %vm185_vm2, %v641_v48  ;;  %2007 = vmatprep.mubr.msk.f32.mxu0 %vm2245_vm1, %v2244_v31 }
 0x313   :  { %2010 = vmatprep.subr.mxu1 %v2244_v31  ;;  %2015 = vmatprep.subr.mxu0 %v2244_v31 }
 0x314   :  { %v717_v49 = vpop.permute.xlu1 %716  ;;  %2003 = vmatmul.mubr.msk.f32.vlgmr.msra.gmra.mrb[8].mxu1 %vm185_vm2, %v2377_v40 }
 0x315   :  { %2008 = vmatmul.mubr.msk.f32.vlgmr.msra.gmra.mrb[4].mxu0 %vm185_vm2, %v2374_v39  ;;  %2011 = vmatpush3.xpose.msk.msra.mxu1 %vm185_vm2, %v717_v49 }
 0x316   :  { %2012 = vmatprep.mubr.msk.f32.mxu1 %vm2245_vm1, %v2244_v31  ;;  %2020 = vmatprep.subr.mxu1 %v2244_v31 }
 0x317   :  { %2017 = vmatprep.mubr.msk.f32.mxu0 %vm2245_vm1, %v2244_v31 }
 0x318   :  { %2013 = vmatmul.mubr.msk.f32.vlgmr.msra.gmra.mrb[10].mxu1 %vm185_vm2, %v2383_v42 }
 0x319   :  { %2022 = vmatprep.mubr.msk.f32.mxu1 %vm2245_vm1, %v2244_v31 }
 0x375   :  { %v256_v50 = vpop.f32.mrb[2].mxu1 }
 0x376   :  { %v1979_v51 = vpop.f32.mrb[3].mxu1  ;;  %v792_v52 = vsel %vm185_vm2, %v256_v50, -inf }
 0x377   :  { %793 = vmax.xlane.f32.xlu0 %v792_v52 }
 0x37c   :  { %v332_v53 = vpop.f32.mrb[4].mxu1 }
 0x37d   :  { %v1984_v54 = vpop.f32.mrb[5].mxu1  ;;  %v795_v55 = vsel %vm185_vm2, %v332_v53, -inf }
 0x37e   :  { %796 = vmax.xlane.f32.xlu1 %v795_v55 }
 0x3df   :  { %v484_v56 = vpop.f32.mrb[6].mxu1 }
 0x3e0   :  { %v408_v57 = vpop.f32.mrb[0].mxu0  ;;  %v1994_v58 = vpop.f32.mrb[7].mxu1  ;;  %v801_v59 = vsel %vm185_vm2, %v484_v56, -inf }
 0x3e1   :  { %802 = vmax.xlane.f32.xlu0 %v801_v59  ;;  %v1989_v60 = vpop.f32.mrb[1].mxu0  ;;  %v798_v62 = vsel %vm185_vm2, %v408_v57, -inf }
 0x3e4   :  { %v560_v61 = vpop.f32.mrb[2].mxu0 }
 0x3e5   :  { %799 = vmax.xlane.f32.xlu0 %v798_v62  ;;  %v1999_v63 = vpop.f32.mrb[3].mxu0  ;;  %v804_v6 = vsel %vm185_vm2, %v560_v61, -inf }
 0x3e7   :  { %v636_v2 = vpop.f32.mrb[8].mxu1 }
 0x3e8   :  { %v2004_v3 = vpop.f32.mrb[9].mxu1  ;;  %v712_v4 = vpop.f32.mrb[4].mxu0  ;;  %v807_v5 = vsel %vm185_vm2, %v636_v2, -inf }
 0x3e9   :  { %808 = vmax.xlane.f32.xlu1 %v807_v5  ;;  %805 = vmax.xlane.f32.xlu0 %v804_v6  ;;  %v2009_v7 = vpop.f32.mrb[5].mxu0  ;;  %v810_v11 = vsel %vm185_vm2, %v712_v4, -inf }
 0x3eb   :  { %v788_v8 = vpop.f32.mrb[10].mxu1 }
 0x3ec   :  { %v2014_v9 = vpop.f32.mrb[11].mxu1  ;;  %v813_v10 = vsel %vm185_vm2, %v788_v8, -inf }
 0x3ed   :  { %814 = vmax.xlane.f32.xlu1 %v813_v10  ;;  %811 = vmax.xlane.f32.xlu0 %v810_v11 }
 0x3fe   :  { %956 = vrot.lane.b32.xlu1 %v2354_v33, %s2250_s13 }
 0x402   :  { %1032 = vrot.lane.b32.xlu1 %v2369_v37, %s2250_s13 }
 0x403   :  { %880 = vrot.lane.b32.xlu0 %v2356_v35, %s2250_s13 }
 0x404   :  { %v794_v12 = vpop.xlane.xlu0 %793 }
 0x405   :  { %v816_v13 = vsub.f32 %v256_v50, %v794_v12 }
 0x406   :  { %1108 = vrot.lane.b32.xlu1 %v2366_v36, %s2250_s13 }
 0x407   :  { %1184 = vrot.lane.b32.xlu0 %v2372_v38, %s2250_s13  ;;  %v824_v14 = vmul.f32 1.442695, %v816_v13 }
 0x409   :  { %2153 = vpow2.f32 %v824_v14 }
 0x40a   :  { %1260 = vrot.lane.b32.xlu1 %v2377_v40, %s2250_s13 }
 0x40b   :  { %v797_v15 = vpop.xlane.xlu1 %796 }
 0x40c   :  { %v817_v16 = vsub.f32 %v332_v53, %v797_v15 }
 0x40e   :  { %v826_v17 = vmul.f32 1.442695, %v817_v16 }
 0x410   :  { %2155 = vpow2.f32 %v826_v17 }
 0x413   :  { %v2452_v18 = vpop.eup %2153 }
 0x414   :  { %v840_v19 = vsel %vm185_vm2, %v2452_v18, 0.0 }
 0x41a   :  { %v2456_v20 = vpop.eup %2155 }
 0x41b   :  { %v843_v21 = vsel %vm185_vm2, %v2456_v20, 0.0 }
 0x426   :  { %841 = vadd.xlane.f32.xlu0 %v840_v19 }
 0x42e   :  { %844 = vadd.xlane.f32.xlu1 %v843_v21 }
 0x46e   :  { %v803_v22 = vpop.xlane.xlu0 %802 }
 0x46f   :  { %v819_v23 = vsub.f32 %v484_v56, %v803_v22 }
 0x471   :  { %v830_v24 = vmul.f32 1.442695, %v819_v23 }
 0x472   :  { %v800_v25 = vpop.xlane.xlu0 %799 }
 0x473   :  { %2157 = vpow2.f32 %v830_v24  ;;  %v818_v26 = vsub.f32 %v408_v57, %v800_v25 }
 0x475   :  { %v828_v27 = vmul.f32 1.442695, %v818_v26 }
 0x476   :  { %v809_v28 = vpop.xlane.xlu1 %808  ;;  %v806_v29 = vpop.xlane.xlu0 %805 }
 0x477   :  { %2159 = vpow2.f32 %v828_v27  ;;  %v821_v30 = vsub.f32 %v636_v2, %v809_v28  ;;  %v820_v32 = vsub.f32 %v560_v61, %v806_v29  ;;  %v1520_v27 = vld [vmem:[%s2607_s3] sm:$0xff]  ;;  %v1521_v28 = vld [vmem:[%s2607_s3 + $0x8] sm:$0xff] }
 0x478   :  { %v2104_v29 = vpack.c.bf16 %v1521_v28, %v1520_v27  ;;  %v1750_v28 = vld [vmem:[%s2611_s7] sm:$0xff] }
 0x479   :  { %v834_v33 = vmul.f32 1.442695, %v821_v30  ;;  %v832_v34 = vmul.f32 1.442695, %v820_v32  ;;  %v1523_v30 = vld [vmem:[%s2607_s3 + $0x18] sm:$0xff] }
 0x47a   :  { %v815_v35 = vpop.xlane.xlu1 %814  ;;  %v812_v36 = vpop.xlane.xlu0 %811 }
 0x47b   :  { %2161 = vpow2.f32 %v834_v33  ;;  %v823_v37 = vsub.f32 %v788_v8, %v815_v35  ;;  %v822_v38 = vsub.f32 %v712_v4, %v812_v36 }
 0x47c   :  { %2163 = vpow2.f32 %v832_v34 }
 0x47d   :  { %v2158_v40 = vpop.eup %2157  ;;  %v838_v41 = vmul.f32 1.442695, %v823_v37  ;;  %v836_v43 = vmul.f32 1.442695, %v822_v38 }
 0x47e   :  { %v957_v44 = vpop.permute.xlu1 %956  ;;  %v881_v45 = vpop.permute.xlu0 %880  ;;  %v849_v46 = vsel %vm185_vm2, %v2158_v40, 0.0 }
 0x47f   :  { %2165 = vpow2.f32 %v838_v41  ;;  %2021 = vmatpush3.msra.mxu1 %v957_v44  ;;  %850 = vadd.xlane.f32.xlu1 %v849_v46 }
 0x480   :  { %2167 = vpow2.f32 %v836_v43  ;;  %2016 = vmatpush3.msra.mxu0 %v881_v45  ;;  %2030 = vmatprep.subr.mxu1 %v2244_v31 }
 0x481   :  { %v2160_v47 = vpop.eup %2159  ;;  %2025 = vmatprep.subr.mxu0 %v2244_v31 }
 0x482   :  { %v846_v48 = vsel %vm185_vm2, %v2160_v47, 0.0  ;;  %v1033_v57 = vpop.permute.xlu1 %1032  ;;  %v1185_v58 = vpop.permute.xlu0 %1184 }
 0x483   :  { %847 = vadd.xlane.f32.xlu0 %v846_v48 }
 0x485   :  { %v2162_v49 = vpop.eup %2161 }
 0x486   :  { %v2164_v50 = vpop.eup %2163  ;;  %v855_v51 = vsel %vm185_vm2, %v2162_v49, 0.0  ;;  %v1109_v59 = vpop.permute.xlu1 %1108 }
 0x487   :  { %856 = vadd.xlane.f32.xlu1 %v855_v51  ;;  %v852_v52 = vsel %vm185_vm2, %v2164_v50, 0.0 }
 0x488   :  { %853 = vadd.xlane.f32.xlu0 %v852_v52 }
 0x489   :  { %v2466_v53 = vpop.eup %2165 }
 0x48a   :  { %v2468_v54 = vpop.eup %2167  ;;  %v861_v55 = vsel %vm185_vm2, %v2466_v53, 0.0  ;;  %v1261_v61 = vpop.permute.xlu1 %1260 }
 0x48b   :  { %862 = vadd.xlane.f32.xlu1 %v861_v55  ;;  %v858_v56 = vsel %vm185_vm2, %v2468_v54, 0.0 }
 0x48c   :  { %859 = vadd.xlane.f32.xlu0 %v858_v56 }
 0x49c   :  { %1412 = vrot.lane.b32.xlu1 %v2383_v42, %s2250_s13 }
 0x4a2   :  { %1336 = vrot.lane.b32.xlu0 %v2374_v39, %s2250_s13 }
 0x4b3   :  { %v842_v60 = vpop.xlane.xlu0 %841 }
 0x4b4   :  { %2169 = vrcp.f32 %v842_v60 }
 0x4bb   :  { %v845_v62 = vpop.xlane.xlu1 %844 }
 0x4bc   :  { %2171 = vrcp.f32 %v845_v62 }
 0x4be   :  { %v2170_v63 = vpop.eup %2169 }
 0x4bf   :  { %v872_v2 = vmul.f32 %v2170_v63, %v2452_v18 }
 0x4c1   :  { %2018 = vmatmul.mubr.msk.f32.vlgmr.msra.gmra.mrb[6].mxu0 %vm185_vm2, %v872_v2 }
 0x4c2   :  { %2026 = vmatpush3.msra.mxu0 %v1033_v57  ;;  %2027 = vmatprep.mubr.msk.f32.mxu0 %vm2245_vm1, %v2244_v31 }
 0x4c3   :  { %2035 = vmatprep.subr.mxu0 %v2244_v31 }
 0x4c6   :  { %v2172_v39 = vpop.eup %2171 }
 0x4c7   :  { %v873_v42 = vmul.f32 %v2172_v39, %v2456_v20 }
 0x4c9   :  { %2023 = vmatmul.mubr.msk.f32.vlgmr.msra.gmra.mrb[12].mxu1 %vm185_vm2, %v873_v42 }
 0x4ca   :  { %2031 = vmatpush3.msra.mxu1 %v1109_v59  ;;  %2032 = vmatprep.mubr.msk.f32.mxu1 %vm2245_vm1, %v2244_v31  ;;  %v1895_v59 = vld [vmem:[%s2608_s4] ss:$0 sm:$0xff] }
 0x4cb   :  { %2040 = vmatprep.subr.mxu1 %v2244_v31 }
 0x50c   :  { %v851_v3 = vpop.xlane.xlu1 %850 }
 0x50d   :  { %2173 = vrcp.f32 %v851_v3 }
 0x510   :  { %v848_v4 = vpop.xlane.xlu0 %847 }
 0x511   :  { %2175 = vrcp.f32 %v848_v4 }
 0x514   :  { %v857_v5 = vpop.xlane.xlu1 %856 }
 0x515   :  { %2177 = vrcp.f32 %v857_v5  ;;  %v854_v6 = vpop.xlane.xlu0 %853 }
 0x516   :  { %2179 = vrcp.f32 %v854_v6 }
 0x517   :  { %v2174_v7 = vpop.eup %2173 }
 0x518   :  { %v875_v8 = vmul.f32 %v2174_v7, %v2158_v40  ;;  %v863_v9 = vpop.xlane.xlu1 %862 }
 0x519   :  { %2181 = vrcp.f32 %v863_v9  ;;  %v860_v10 = vpop.xlane.xlu0 %859 }
 0x51a   :  { %2183 = vrcp.f32 %v860_v10  ;;  %2033 = vmatmul.mubr.msk.f32.vlgmr.msra.gmra.mrb[14].mxu1 %vm185_vm2, %v875_v8 }
 0x51b   :  { %v2176_v11 = vpop.eup %2175  ;;  %2041 = vmatpush3.msra.mxu1 %v1261_v61  ;;  %2042 = vmatprep.mubr.msk.f32.mxu1 %vm2245_vm1, %v2244_v31 }
 0x51c   :  { %v874_v12 = vmul.f32 %v2176_v11, %v2160_v47  ;;  %2050 = vmatprep.subr.mxu1 %v2244_v31  ;;  %v1413_v17 = vpop.permute.xlu1 %1412 }
 0x51d   :  { %v1337_v19 = vpop.permute.xlu0 %1336 }
 0x51e   :  { %2028 = vmatmul.mubr.msk.f32.vlgmr.msra.gmra.mrb[8].mxu0 %vm185_vm2, %v874_v12  ;;  %v1640_v12 = vld [vmem:[%s2609_s5] sm:$0xff] }
 0x51f   :  { %v2178_v13 = vpop.eup %2177  ;;  %2036 = vmatpush3.msra.mxu0 %v1185_v58  ;;  %2037 = vmatprep.mubr.msk.f32.mxu0 %vm2245_vm1, %v2244_v31 }
 0x520   :  { %v2180_v14 = vpop.eup %2179  ;;  %v877_v15 = vmul.f32 %v2178_v13, %v2162_v49  ;;  %2045 = vmatprep.subr.mxu0 %v2244_v31  ;;  %v1641_v13 = vld [vmem:[%s2609_s5 + $0x8] sm:$0xff] }
 0x521   :  { %v876_v16 = vmul.f32 %v2180_v14, %v2164_v50  ;;  %v2112_v14 = vpack.c.bf16 %v1641_v13, %v1640_v12 }
 0x522   :  { %2043 = vmatmul.mubr.msk.f32.vlgmr.msra.gmra.mrb[16].mxu1 %vm185_vm2, %v877_v15  ;;  %v1642_v15 = vld [vmem:[%s2609_s5 + $0x10] sm:$0xff] }
 0x523   :  { %v2182_v18 = vpop.eup %2181  ;;  %2038 = vmatmul.mubr.msk.f32.vlgmr.msra.gmra.mrb[10].mxu0 %vm185_vm2, %v876_v16  ;;  %2051 = vmatpush3.msra.mxu1 %v1413_v17  ;;  %v1643_v16 = vld [vmem:[%s2609_s5 + $0x18] sm:$0xff] }
 0x524   :  { %v2184_v20 = vpop.eup %2183  ;;  %v879_v21 = vmul.f32 %v2182_v18, %v2466_v53  ;;  %2046 = vmatpush3.msra.mxu0 %v1337_v19  ;;  %2047 = vmatprep.mubr.msk.f32.mxu0 %vm2245_vm1, %v2244_v31  ;;  %v2116_v17 = vpack.c.bf16 %v1643_v16, %v1642_v15 }
 0x525   :  { %v878_v22 = vmul.f32 %v2184_v20, %v2468_v54  ;;  %2052 = vmatprep.mubr.msk.f32.mxu1 %vm2245_vm1, %v2244_v31  ;;  %2105 = vmatprep.subr.bf16.mxu0 %v2104_v29  ;;  %v1522_v31 = vld [vmem:[%s2607_s3 + $0x10] sm:$0xff]  ;;  %s2252_s3 = smov 24  }
 0x526   :  { %2053 = vmatmul.mubr.msk.f32.vlgmr.msra.gmra.mrb[18].mxu1 %vm185_vm2, %v879_v21  ;;  %v2108_v32 = vpack.c.bf16 %v1523_v30, %v1522_v31  ;;  %2113 = vmatprep.subr.bf16.mxu1 %v2112_v14  ;;  %v1752_v30 = vld [vmem:[%s2611_s7 + $0x10] sm:$0xff] }
 0x527   :  { %2048 = vmatmul.mubr.msk.f32.vlgmr.msra.gmra.mrb[12].mxu0 %vm185_vm2, %v878_v22  ;;  %2115 = vmatpush3.bf16.msra.mxu1 %v2112_v14 }
 0x528   :  { %2107 = vmatpush3.bf16.msra.mxu0 %v2104_v29  ;;  %2117 = vmatprep.subr.bf16.mxu1 %v2116_v17  ;;  %v1751_v29 = vld [vmem:[%s2611_s7 + $0x8] sm:$0xff] }
 0x529   :  { %2109 = vmatprep.subr.bf16.mxu0 %v2108_v32  ;;  %v2120_v31 = vpack.c.bf16 %v1751_v29, %v1750_v28 }
 0x52b   :  { %2119 = vmatpush3.bf16.msra.mxu1 %v2116_v17 }
 0x52c   :  { %2111 = vmatpush3.bf16.msra.mxu0 %v2108_v32  ;;  %v1753_v32 = vld [vmem:[%s2611_s7 + $0x18] sm:$0xff] }
 0x52d   :  { %2121 = vmatprep.subr.bf16.mxu0 %v2120_v31 }
 0x594   :  { %v952_v23 = vpop.f32.mrb[6].mxu0 }
 0x595   :  { %v2019_v24 = vpop.f32.mrb[7].mxu0 }
 0x59c   :  { %v1028_v25 = vpop.f32.mrb[12].mxu1 }
 0x59d   :  { %v2024_v26 = vpop.f32.mrb[13].mxu1 }
 0x5ed   :  { %v1180_v33 = vpop.f32.mrb[14].mxu1 }
 0x5ee   :  { %1492 = vrot.lane.b32.xlu1 %v1180_v33, %s2243_s20  ;;  %v2034_v34 = vpop.f32.mrb[15].mxu1  ;;  %v2124_v33 = vpack.c.bf16 %v1753_v32, %v1752_v30 }
 0x5ef   :  { %v1754_v34 = vld [vmem:[%s2611_s7 + $0x20] sm:$0xff] }
 0x5f1   :  { %v1104_v35 = vpop.f32.mrb[8].mxu0 }
 0x5f2   :  { %1490 = vrot.lane.b32.xlu0 %v1104_v35, %s2243_s20  ;;  %v2029_v36 = vpop.f32.mrb[9].mxu0  ;;  %v1755_v35 = vld [vmem:[%s2611_s7 + $0x28] sm:$0xff] }
 0x5f3   :  { %v2128_v36 = vpack.c.bf16 %v1755_v35, %v1754_v34 }
 0x5f5   :  { %v1332_v37 = vpop.f32.mrb[16].mxu1 }
 0x5f6   :  { %v1256_v38 = vpop.f32.mrb[10].mxu0  ;;  %1500 = vrot.lane.b32.xlu1 %v1332_v37, %s2251_s23  ;;  %v2044_v40 = vpop.f32.mrb[17].mxu1  ;;  %v1756_v37 = vld [vmem:[%s2611_s7 + $0x30] sm:$0xff] }
 0x5f7   :  { %1498 = vrot.lane.b32.xlu0 %v1256_v38, %s2251_s23  ;;  %v2039_v41 = vpop.f32.mrb[11].mxu0  ;;  %v1757_v38 = vld [vmem:[%s2611_s7 + $0x38] sm:$0xff] }
 0x5f8   :  { %v2132_v40 = vpack.c.bf16 %v1757_v38, %v1756_v37  ;;  %v1898_v41 = vld [vmem:[%s2610_s6] ss:$0 sm:$0xff] }
 0x5f9   :  { %v1484_v43 = vpop.f32.mrb[18].mxu1 }
 0x5fa   :  { %v1408_v44 = vpop.f32.mrb[12].mxu0  ;;  %1508 = vrot.lane.b32.xlu1 %v1484_v43, %s2252_s3  ;;  %v2054_v45 = vpop.f32.mrb[19].mxu1 }
 0x5fb   :  { %1506 = vrot.lane.b32.xlu0 %v1408_v44, %s2252_s3  ;;  %v2049_v46 = vpop.f32.mrb[13].mxu0 }
 0x660   :  { %v1493_v47 = vpop.permute.xlu1 %1492 }
 0x661   :  { %v1513_v51 = vsel %vm185_vm2, %v1028_v25, %v1493_v47 }
 0x664   :  { %v1491_v48 = vpop.permute.xlu0 %1490 }
 0x665   :  { %v1512_v52 = vsel %vm185_vm2, %v952_v23, %v1491_v48 }
 0x668   :  { %v1501_v49 = vpop.permute.xlu1 %1500 }
 0x669   :  { %v1499_v50 = vpop.permute.xlu0 %1498  ;;  %v1516_v53 = vsel %vm1514_vm3, %v1513_v51, %v1501_v49 }
 0x66a   :  { %v1515_v55 = vsel %vm1514_vm3, %v1512_v52, %v1499_v50 }
 0x66c   :  { %v1509_v54 = vpop.permute.xlu1 %1508 }
 0x66d   :  { %v1519_v56 = vsel %vm1517_vm4, %v1516_v53, %v1509_v54  ;;  %v1507_v57 = vpop.permute.xlu0 %1506 }
 0x66e   :  { %v1518_v58 = vsel %vm1517_vm4, %v1515_v55, %v1507_v57 }
 0x66f   :  { %2063 = vmatprep.mubr.msk.f32.mxu0 %vm49_vm0, %v1518_v58 }
 0x670   :  { %2064 = vmatmul.mubr.msk.f32.vlgmr.msra.gmra.mrb[14].mxu0 %vm49_vm0, %v1519_v56 }
 0x671   :  { %2123 = vmatpush3.bf16.msra.mxu0 %v2120_v31 }
 0x672   :  { %2125 = vmatprep.subr.bf16.mxu0 %v2124_v33 }
 0x675   :  { %2127 = vmatpush3.bf16.msra.mxu0 %v2124_v33 }
 0x676   :  { %2129 = vmatprep.subr.bf16.mxu0 %v2128_v36 }
 0x679   :  { %2131 = vmatpush3.bf16.msra.mxu0 %v2128_v36 }
 0x67a   :  { %2133 = vmatprep.subr.bf16.mxu0 %v2132_v40 }
 0x67d   :  { %2135 = vmatpush3.bf16.msra.mxu0 %v2132_v40 }
 0x743   :  { %v2065_v60 = vpop.f32.mrb[14].mxu0 }
 0x744   :  { %v1609_v61 = vadd.f32 %v2065_v60, %v1895_v59  ;;  %v1603_v62 = vpop.f32.mrb[15].mxu0 }
 0x745   :  { %v1604_v63 = vadd.f32 %v1895_v59, %v1603_v62 }
 0x746   :  { %v2528_v2 = vadd.f32 %v1609_v61, %v2321_v1 }
 0x747   :  { %v2531_v39 = vadd.f32 %v1604_v63, %v2319_v0 }
 0x748   :  { %v1617_v42 = vsel %vm49_vm0, %v2528_v2, 0.0 }
 0x749   :  { %1618 = vadd.xlane.f32.xlu1 %v1617_v42  ;;  %v1614_v3 = vsel %vm49_vm0, %v2531_v39, 0.0 }
 0x74a   :  { %1615 = vadd.xlane.f32.xlu0 %v1614_v3  ;;  %v1901_v3 = vld [vmem:[%s2612_s8] ss:$0 sm:$0xff] }
 0x7d6   :  { %v1619_v4 = vpop.xlane.xlu1 %1618 }
 0x7d7   :  { %v1621_v5 = vmul.f32 0.03125, %v1619_v4  ;;  %v1616_v6 = vpop.xlane.xlu0 %1615 }
 0x7d8   :  { %v1620_v7 = vmul.f32 0.03125, %v1616_v6 }
 0x7d9   :  { %v1623_v8 = vsub.f32 %v2528_v2, %v1621_v5 }
 0x7da   :  { %v1622_v1 = vsub.f32 %v2531_v39, %v1620_v7 }
 0x7db   :  { %v1625_v10 = vmul.f32 %v1623_v8, %v1623_v8 }
 0x7dc   :  { %v1624_v9 = vmul.f32 %v1622_v1, %v1622_v1 }
 0x7dd   :  { %v1629_v11 = vsel %vm49_vm0, %v1625_v10, 0.0 }
 0x7de   :  { %v1626_v0 = vsel %vm49_vm0, %v1624_v9, 0.0 }
 0x7df   :  { %1627 = vadd.xlane.f32.xlu0 %v1626_v0 }
 0x7e3   :  { %1630 = vadd.xlane.f32.xlu0 %v1629_v11 }
 0x86c   :  { %v1628_v18 = vpop.xlane.xlu0 %1627 }
 0x86d   :  { %v1632_v19 = vmul.f32 0.03125, %v1628_v18 }
 0x86f   :  { %v1634_v20 = vadd.f32 1e-06, %v1632_v19 }
 0x870   :  { %v1631_v21 = vpop.xlane.xlu0 %1630 }
 0x871   :  { %2185 = vrsqrt.f32 %v1634_v20  ;;  %v1633_v22 = vmul.f32 0.03125, %v1631_v21 }
 0x873   :  { %v1635_v23 = vadd.f32 1e-06, %v1633_v22 }
 0x875   :  { %2187 = vrsqrt.f32 %v1635_v23 }
 0x87b   :  { %v2186_v24 = vpop.eup %2185 }
 0x87c   :  { %v1638_v25 = vmul.f32 %v2186_v24, %v1622_v1 }
 0x87e   :  { %2074 = vmatprep.mubr.msk.f32.mxu1 %vm49_vm0, %v1638_v25 }
 0x87f   :  { %v2188_v26 = vpop.eup %2187 }
 0x880   :  { %v1639_v27 = vmul.f32 %v2188_v26, %v1623_v8 }
 0x882   :  { %2075 = vmatmul.mubr.msk.f32.vlgmr.msra.gmra.mrb[20].mxu1 %vm49_vm0, %v1639_v27 }
 0x955   :  { %v2076_v43 = vpop.f32.mrb[20].mxu1 }
 0x956   :  { %v1729_v44 = vadd.f32 %v2076_v43, %v1898_v41  ;;  %v1723_v45 = vpop.f32.mrb[21].mxu1 }
 0x957   :  { %v1724_v46 = vadd.f32 %v1898_v41, %v1723_v45 }
 0x958   :  { %v1735_v47 = vmul.f32 0.044715, %v1729_v44  ;;  %v1733_v62 = vmul.f32 0.5, %v1729_v44 }
 0x959   :  { %v1734_v48 = vmul.f32 0.044715, %v1724_v46  ;;  %v1732_v60 = vmul.f32 0.5, %v1724_v46 }
 0x95a   :  { %v1737_v49 = vmul.f32 %v1735_v47, %v1729_v44 }
 0x95b   :  { %v1736_v50 = vmul.f32 %v1734_v48, %v1724_v46 }
 0x95c   :  { %v1739_v51 = vmul.f32 %v1737_v49, %v1729_v44 }
 0x95d   :  { %v1738_v52 = vmul.f32 %v1736_v50, %v1724_v46 }
 0x95e   :  { %v1741_v53 = vadd.f32 %v1739_v51, %v1729_v44 }
 0x95f   :  { %v1740_v54 = vadd.f32 %v1738_v52, %v1724_v46 }
 0x960   :  { %v1743_v55 = vmul.f32 0.7978846, %v1741_v53 }
 0x961   :  { %v1742_v56 = vmul.f32 0.7978846, %v1740_v54 }
 0x962   :  { %2189 = vtanh.f32 %v1743_v55 }
 0x963   :  { %2191 = vtanh.f32 %v1742_v56 }
 0x96c   :  { %v2190_v57 = vpop.eup %2189 }
 0x96d   :  { %v2192_v58 = vpop.eup %2191  ;;  %v1747_v59 = vadd.f32 1.0, %v2190_v57 }
 0x96e   :  { %v1746_v61 = vadd.f32 1.0, %v2192_v58 }
 0x96f   :  { %v1749_v42 = vmul.f32 %v1747_v59, %v1733_v62 }
 0x970   :  { %v1748_v63 = vmul.f32 %v1746_v61, %v1732_v60 }
 0x972   :  { %2093 = vmatprep.mubr.msk.f32.mxu0 %vm1765_vm5, %v1748_v63 }
 0x973   :  { %2094 = vmatmul.mubr.msk.f32.vlgmr.msra.gmra.mrb[16].mxu0 %vm1765_vm5, %v1749_v42 }
 0xa46   :  { %v2095_v4 = vpop.f32.mrb[16].mxu0 }
 0xa47   :  { %v1844_v5 = vadd.f32 %v2095_v4, %v1901_v3  ;;  %v1838_v6 = vpop.f32.mrb[17].mxu0 }
 0xa48   :  { %v1839_v7 = vadd.f32 %v1901_v3, %v1838_v6 }
 0xa49   :  { %v1848_v8 = vadd.f32 %v1844_v5, %v2528_v2 }
 0xa4a   :  { %v1847_v1 = vadd.f32 %v1839_v7, %v2531_v39 }
 0xa4b   :  { %1850 = vst.msk [vmem:[#allocation5 + $0x8] sm:$0xff] %vm49_vm0, %v1848_v8 }
 0xa4c   :  { %1849 = vst.msk [vmem:[#allocation5] sm:$0xff] %vm49_vm0, %v1847_v1 }
 0xa4d   :  { %2226 = shalt.err (!%p2223_p12)
}
 0xa4e   :  { %s2227_s1 = scalar_lea.hbm %s2613_s9, 256 }
 0xa4f   :  { %p2228_p13 = scmp.ne.s32.totalorder %s2613_s9, %s2227_s1  ;;  %p2231_p0 = scmp.lt.u32.totalorder %s2227_s1, %s2613_s9 }
 0xa51   :  { %p2233_p1 = pnand %p2231_p0, %p2228_p13 }
 0xa53   :  { %2236 = shalt.err (!%p2233_p1)
}
 0xa54   :  { %1862 = dma.vmem_to_hbm [thread:$0]  %s1857_s27, 256, %s2613_s9, [#allocation4], %s2242_s19, %s2242_s19, %s2243_s20  }
 0xa55   :  { %2239 = dma.done.wait [#allocation4], 256  }
 0xa56   :  { %2240 = vsyncadd [#allocation4], 4294967040 }
 0xa57   :  { %1866 = vsyncpa [#allocation3], 1 }
 0xa58   :  { %1867 = vsyncpa [#allocation4], 1 }

</bundles_post_ra>
